<compile_context>
chip_gen: v7x
topology: tpu7x:2x2x1
jax: 0.10.0
libtpu: 0.0.40
codegen_flags: <defaults>
</compile_context>

<pallas_src>
import functools

import jax
import jax.numpy as jnp
from jax.experimental import pallas as pl
from jax.experimental.pallas import tpu as pltpu
import numpy as np


def _device_kind():
    try:
        return jax.devices()[0].device_kind.lower()
    except Exception:
        return ""


# --------------------------------------------------------------------------- #
# Kernel 1: f / h projections + per-row logsumexp of the attention logits.
# Grid: (split, B, n_row_local, n_col); row axis = softmax rows i, col axis =
# keys j (inner).  `split` shards the row tiles so a second TensorCore can help
# even when B is small; each (split, b) refills the per-batch g cache itself.
# --------------------------------------------------------------------------- #
def _sa_stats_kernel(x_q_ref, x_kv_ref, wf_ref, wg_ref, wh_ref,
                     bf_ref, bg_ref, bh_ref,
                     ft_out_ref, h_out_ref, lse_out_ref,
                     ft_s, g_all, m_s, d_s, *, exp_dtype):
    qi = pl.program_id(2)          # core-local i-tile index
    ki = pl.program_id(3)          # j-tile (keys)
    nk = pl.num_programs(3)
    t_col = x_kv_ref.shape[2]

    # Per i-tile: project f and h once (channel-major NN matmuls), init state.
    @pl.when(ki == 0)
    def _():
        xq = x_q_ref[0].astype(jnp.bfloat16)                                    # (C, t_row)
        ft_t = jnp.dot(wf_ref[...], xq, preferred_element_type=jnp.float32) + bf_ref[...]
        ht_t = jnp.dot(wh_ref[...], xq, preferred_element_type=jnp.float32) + bh_ref[...]
        ft_b = ft_t.astype(jnp.bfloat16)                                        # (Cf, t_row)
        ft_s[...] = ft_b
        ft_out_ref[0] = ft_b                                                    # lane-dense store
        h_out_ref[0] = jnp.transpose(ht_t).astype(jnp.bfloat16)                 # (t_row, C) for K2 PV
        m_s[...] = jnp.full_like(m_s, -jnp.inf)
        d_s[...] = jnp.zeros_like(d_s)

    # Per (split, batch): project g once per key tile and cache it in VMEM
    # (row-major (t_col, Cf)) so subsequent i-tiles reuse it without HBM reads.
    @pl.when(qi == 0)
    def _():
        xk = x_kv_ref[0].astype(jnp.bfloat16)                                   # (C, t_col)
        gg_t = jnp.dot(wg_ref[...], xk, preferred_element_type=jnp.float32) + bg_ref[...]
        off = pl.multiple_of(ki * t_col, t_col)
        g_all[pl.ds(off, t_col), :] = jnp.transpose(gg_t).astype(jnp.bfloat16)  # (t_col, Cf)

    # Logits tile, transposed: s_t[j, i] = sum_o g[o, j] * f[o, i]  (NN matmul).
    off = pl.multiple_of(ki * t_col, t_col)
    g_blk = g_all[pl.ds(off, t_col), :]                                         # (t_col, Cf)
    s_t = jnp.dot(g_blk, ft_s[...], preferred_element_type=jnp.float32)         # (t_col, t_row)

    # Online max / sum over the key (sublane) axis; stats stay (1, t_row) so the
    # LSE store is lane-dense and K2 re-reads it broadcast over sublanes.
    m_prev = m_s[...]
    m_new = jnp.maximum(m_prev, jnp.max(s_t, axis=0, keepdims=True))
    alpha = jnp.exp(m_prev - m_new)
    e = jnp.exp((s_t - m_new).astype(exp_dtype))          # bf16 exp on v6e/v7x, f32 on v5e
    d_s[...] = alpha * d_s[...] + jnp.sum(e.astype(jnp.float32), axis=0, keepdims=True)
    m_s[...] = m_new

    @pl.when(ki == nk - 1)
    def _():
        lse_out_ref[0] = m_s[...] + jnp.log(d_s[...])                            # (1, t_row)


# --------------------------------------------------------------------------- #
# Kernel 2: apply attention.  Grid: (B, n_col, n_io); output tile over j,
# accumulation over i super-tiles of size t_i (inner, 'arbitrary').  When t_i
# == N the ft/h/lse blocks are VMEM-resident per batch (index maps depend only
# on b / io, so the pipeline does not re-DMA them across j-tiles).
# --------------------------------------------------------------------------- #
def _sa_apply_kernel(x_j_ref, ft_ref, h_ref, lse_ref, wg_ref, bg_ref, gamma_ref,
                     out_ref, g_s, acc_s, *, exp_dtype):
    io = pl.program_id(2)
    n_io = pl.num_programs(2)

    # Per output j-tile: project g once (channel-major), zero the accumulator.
    @pl.when(io == 0)
    def _():
        xj = x_j_ref[0].astype(jnp.bfloat16)                                    # (C, t_col)
        gg_t = jnp.dot(wg_ref[...], xj, preferred_element_type=jnp.float32) + bg_ref[...]
        g_s[...] = jnp.transpose(gg_t).astype(jnp.bfloat16)                     # (t_col, Cf)
        acc_s[...] = jnp.zeros_like(acc_s)

    # s2[j, i] = logits[i, j]; weight = exp(s2 - lse_i) <= 1 (no overflow, no divide).
    s2 = jnp.dot(g_s[...], ft_ref[0], preferred_element_type=jnp.float32)       # (t_col, t_i)
    p = jnp.exp((s2 - lse_ref[0]).astype(exp_dtype)).astype(jnp.bfloat16)
    acc_s[...] += jnp.dot(p, h_ref[0], preferred_element_type=jnp.float32)      # (t_col, C)

    @pl.when(io == n_io - 1)
    def _():
        gamma = gamma_ref[0, 0]                                                 # SMEM scalar
        # One XLU transpose per j-tile -> lane-dense channel-major output block.
        out_ref[0] = (gamma * jnp.transpose(acc_s[...]) + x_j_ref[0]).astype(out_ref.dtype)


def _pick_tile(n, requested=None):
    if requested is not None:
        if n % requested != 0:
            raise ValueError(f"tile {requested} does not divide N={n}")
        return requested
    for cand in (512, 256, 128):
        if n % cand == 0:
            return cand
    # TODO(synk): pad N up to a multiple of 128 with masked keys (exp -> 0) for awkward W*H.
    return n


def _pick_resident_rows(N, t_row, t_col, C, Cf, budget_bytes):
    """i-extent t_i of K2's resident ft/h/lse blocks (multiple of t_row dividing N)."""
    n_row = N // t_row
    # Per softmax-row bytes: double-buffered ft/h/lse blocks + s2(f32)/p(bf16) temps.
    per_row = 2 * (2 * Cf + 2 * C + 4) + 6 * t_col
    for d in range(n_row, 0, -1):
        if n_row % d == 0 and d * t_row * per_row <= budget_bytes:
            return d * t_row
    return t_row


def self_attention_pallas(x_nchw, wf, wg, wh, bf, bg, bh, gamma,
                          *, t_row=None, t_col=None, vmem_limit_bytes=None):
    """x_nchw: (B, C, W, H) float32.  wf, wg: (C//8, C); wh: (C, C);
       bf, bg: (C//8,); bh: (C,); gamma: scalar."""
    B, C, W, H = x_nchw.shape
    N = W * H
    Cf = wf.shape[0]
    t_row = _pick_tile(N, t_row)     # tile along the softmax-row axis i
    t_col = _pick_tile(N, t_col)     # tile along the key / output axis j
    n_row, n_col = N // t_row, N // t_col

    kind = _device_kind()
    is_v7 = ("v7" in kind) or ("tpu7" in kind)
    is_v6 = "v6" in kind
    # bf16 exp only where the VPU/EUP have bf16 paths; keep stats in f32 always.
    exp_dtype = jnp.bfloat16 if (is_v6 or is_v7) else jnp.float32
    if vmem_limit_bytes is None:
        if is_v7:
            vmem_limit_bytes = 48 << 20          # 64 MiB/TC physical on v7x
        elif is_v6 or ("v5" in kind) or ("v4" in kind):
            vmem_limit_bytes = 64 << 20
        # else: leave the compiler default.

    # Row-tile split so K1 (only batch-parallel otherwise) can use a 2nd core.
    n_split = 2 if (n_row % 2 == 0 and n_row >= 2) else 1
    n_row_local = n_row // n_split

    # Channel-major layout everywhere: NCHW -> (B, C, N) is a free reshape.
    x_cn = x_nchw.reshape(B, C, N).astype(jnp.float32)
    wf_b = wf.astype(jnp.bfloat16)               # (Cf, C), native conv layout
    wg_b = wg.astype(jnp.bfloat16)               # (Cf, C)
    wh_b = wh.astype(jnp.bfloat16)               # (C, C)
    bf_c = bf.reshape(Cf, 1).astype(jnp.float32)
    bg_c = bg.reshape(Cf, 1).astype(jnp.float32)
    bh_c = bh.reshape(C, 1).astype(jnp.float32)
    gamma_s = jnp.asarray(gamma, jnp.float32).reshape(1, 1)

    def _params(dim_sem):
        kwargs = dict(dimension_semantics=dim_sem)
        if vmem_limit_bytes is not None:
            kwargs["vmem_limit_bytes"] = vmem_limit_bytes
        return pltpu.CompilerParams(**kwargs)

    # ---- K1: f / h projections + per-row logsumexp ---------------------------
    k1 = functools.partial(_sa_stats_kernel, exp_dtype=exp_dtype)
    ft, h_proj, lse = pl.pallas_call(
        k1,
        out_shape=(jax.ShapeDtypeStruct((B, Cf, N), jnp.bfloat16),   # f, transposed (lane-dense)
                   jax.ShapeDtypeStruct((B, N, C), jnp.bfloat16),    # h, row-major for NN PV
                   jax.ShapeDtypeStruct((B, 1, N), jnp.float32)),    # lse
        grid_spec=pltpu.PrefetchScalarGridSpec(
            num_scalar_prefetch=0,
            grid=(n_split, B, n_row_local, n_col),
            in_specs=[
                pl.BlockSpec((1, C, t_row),
                             lambda s, b, qi, ki: (b, 0, s * n_row_local + qi)),   # x cols i
                # Keys are only read while qi == 0 (g cached in VMEM per (s, b));
                # freezing the block index skips the redundant HBM re-reads.
                pl.BlockSpec((1, C, t_col),
                             lambda s, b, qi, ki: (b, 0, jnp.where(qi == 0, ki, 0))),
                pl.BlockSpec((Cf, C), lambda s, b, qi, ki: (0, 0)),                # Wf
                pl.BlockSpec((Cf, C), lambda s, b, qi, ki: (0, 0)),                # Wg
                pl.BlockSpec((C, C), lambda s, b, qi, ki: (0, 0)),                 # Wh
                pl.BlockSpec((Cf, 1), lambda s, b, qi, ki: (0, 0)),                # bf
                pl.BlockSpec((Cf, 1), lambda s, b, qi, ki: (0, 0)),                # bg
                pl.BlockSpec((C, 1), lambda s, b, qi, ki: (0, 0)),                 # bh
            ],
            out_specs=[
                pl.BlockSpec((1, Cf, t_row),
                             lambda s, b, qi, ki: (b, 0, s * n_row_local + qi)),
                pl.BlockSpec((1, t_row, C),
                             lambda s, b, qi, ki: (b, s * n_row_local + qi, 0)),
                pl.BlockSpec((1, 1, t_row),
                             lambda s, b, qi, ki: (b, 0, s * n_row_local + qi)),
            ],
            scratch_shapes=[
                pltpu.VMEM((Cf, t_row), jnp.bfloat16),    # f^T tile, resident per i-tile
                pltpu.VMEM((N, Cf), jnp.bfloat16),        # g cache, per (split, batch)
                pltpu.VMEM((1, t_row), jnp.float32),      # running max
                pltpu.VMEM((1, t_row), jnp.float32),      # running sum
            ]),
        compiler_params=_params(("parallel", "parallel", "arbitrary", "arbitrary")),
    )(x_cn, x_cn, wf_b, wg_b, wh_b, bf_c, bg_c, bh_c)

    # ---- K2: out[:, j] = gamma * sum_i exp(logits[i,j]-lse_i) h[:, i] + x[:, j]
    budget = (vmem_limit_bytes if vmem_limit_bytes is not None else (32 << 20)) // 2
    t_i = _pick_resident_rows(N, t_row, t_col, C, Cf, budget)
    n_io = N // t_i

    k2 = functools.partial(_sa_apply_kernel, exp_dtype=exp_dtype)
    out_cn = pl.pallas_call(
        k2,
        out_shape=jax.ShapeDtypeStruct((B, C, N), jnp.float32),
        grid_spec=pltpu.PrefetchScalarGridSpec(
            num_scalar_prefetch=0,
            grid=(B, n_col, n_io),
            in_specs=[
                pl.BlockSpec((1, C, t_col), lambda b, ji, io: (b, 0, ji)),     # x cols j
                pl.BlockSpec((1, Cf, t_i), lambda b, ji, io: (b, 0, io)),      # f^T (resident)
                pl.BlockSpec((1, t_i, C), lambda b, ji, io: (b, io, 0)),       # h   (resident)
                pl.BlockSpec((1, 1, t_i), lambda b, ji, io: (b, 0, io)),       # lse (resident)
                pl.BlockSpec((Cf, C), lambda b, ji, io: (0, 0)),               # Wg
                pl.BlockSpec((Cf, 1), lambda b, ji, io: (0, 0)),               # bg
                pl.BlockSpec(memory_space=pltpu.SMEM),                         # gamma
            ],
            out_specs=pl.BlockSpec((1, C, t_col), lambda b, ji, io: (b, 0, ji)),
            scratch_shapes=[
                pltpu.VMEM((t_col, Cf), jnp.bfloat16),    # g tile, resident per j-tile
                pltpu.VMEM((t_col, C), jnp.float32),      # output accumulator
            ]),
        compiler_params=_params(("parallel", "parallel", "arbitrary")),
    )(x_cn, ft, h_proj, lse, wg_b, bg_c, gamma_s)

    return out_cn.reshape(B, C, W, H)       # free reshape: output already channel-major


def self_attention_ref(x_nchw, wf, wg, wh, bf, bg, bh, gamma):
    """Pure-JAX reference mirroring the PyTorch forward exactly."""
    B, C, W, H = x_nchw.shape
    N = W * H
    x = x_nchw.reshape(B, C, N)
    f = jnp.einsum('oc,bcn->bon', wf, x) + bf[None, :, None]
    g = jnp.einsum('oc,bcn->bon', wg, x) + bg[None, :, None]
    h = jnp.einsum('oc,bcn->bon', wh, x) + bh[None, :, None]
    attn = jax.nn.softmax(jnp.einsum('bki,bkj->bij', f, g), axis=-1)
    sa = jnp.einsum('bci,bij->bcj', h, attn)        # torch.bmm(h, attention)
    return (gamma * sa + x).reshape(B, C, W, H)


def _xavier_uniform(key, out_c, in_c):
    # Conv2d(out, in, 1, 1): fan_in = in, fan_out = out
    bound = float(np.sqrt(6.0 / (in_c + out_c)))
    return jax.random.uniform(key, (out_c, in_c), jnp.float32, -bound, bound)


if __name__ == "__main__":
    B, C, W, H = 2, 16, 16, 16          # in_dim = 16 -> C//8 = 2 ; N = 256
    Cf = C // 8

    key = jax.random.PRNGKey(0)
    kx, kf, kg, kh, kbf, kbg, kbh = jax.random.split(key, 7)
    x = jax.random.normal(kx, (B, C, W, H), jnp.float32)

    # Module __init__: xavier-uniform conv weights, zero biases, gamma = 0.
    wf = _xavier_uniform(kf, Cf, C)
    wg = _xavier_uniform(kg, Cf, C)
    wh = _xavier_uniform(kh, C, C)
    bf0 = jnp.zeros((Cf,), jnp.float32)
    bg0 = jnp.zeros((Cf,), jnp.float32)
    bh0 = jnp.zeros((C,), jnp.float32)

    # 128-wide tiles -> K1 grid (2, B, 1, 2), K2 grid (B, 2, 1): exercises the
    # tiled online-softmax path, the row-split axis, and the resident K2 path.
    run = lambda *a: self_attention_pallas(*a, t_row=128, t_col=128)

    # gamma = 0 (module init value): output must equal the input exactly.
    out0 = run(x, wf, wg, wh, bf0, bg0, bh0, jnp.float32(0.0))
    jax.block_until_ready(out0)
    assert np.allclose(np.asarray(out0), np.asarray(x), rtol=0.0, atol=1e-6)

    # Non-zero gamma + non-zero biases: exercises the full attention path.
    bf1 = 0.1 * jax.random.normal(kbf, (Cf,), jnp.float32)
    bg1 = 0.1 * jax.random.normal(kbg, (Cf,), jnp.float32)
    bh1 = 0.1 * jax.random.normal(kbh, (C,), jnp.float32)
    gamma1 = jnp.float32(0.75)
    out1 = run(x, wf, wg, wh, bf1, bg1, bh1, gamma1)
    jax.block_until_ready(out1)
    ref1 = self_attention_ref(x, wf, wg, wh, bf1, bg1, bh1, gamma1)
    # bf16 MXU operands / bf16 exp on v6e+ with f32 accumulation -> bf16-level tolerance.
    assert np.allclose(np.asarray(out1), np.asarray(ref1), rtol=5e-2, atol=5e-2)

    print("KERNEL_OK")
</pallas_src>

<mosaic_0001>
module attributes {stable_mosaic.version = 11 : i64} {
  func.func @_sa_stats_kernel(%arg0: i32, %arg1: i32, %arg2: i32, %arg3: i32, %arg4: memref<1x16x128xf32, #tpu.memory_space<vmem>>, %arg5: memref<1x16x128xf32, #tpu.memory_space<vmem>>, %arg6: memref<2x16xbf16, #tpu.memory_space<vmem>>, %arg7: memref<2x16xbf16, #tpu.memory_space<vmem>>, %arg8: memref<16x16xbf16, #tpu.memory_space<vmem>>, %arg9: memref<2x1xf32, #tpu.memory_space<vmem>>, %arg10: memref<2x1xf32, #tpu.memory_space<vmem>>, %arg11: memref<16x1xf32, #tpu.memory_space<vmem>>, %arg12: memref<1x2x128xbf16, #tpu.memory_space<vmem>>, %arg13: memref<1x128x16xbf16, #tpu.memory_space<vmem>>, %arg14: memref<1x1x128xf32, #tpu.memory_space<vmem>>, %arg15: memref<2x128xbf16, #tpu.memory_space<vmem>>, %arg16: memref<256x2xbf16, #tpu.memory_space<vmem>>, %arg17: memref<1x128xf32, #tpu.memory_space<vmem>>, %arg18: memref<1x128xf32, #tpu.memory_space<vmem>>) attributes {dimension_semantics = [#tpu.dimension_semantics<parallel>, #tpu.dimension_semantics<parallel>, #tpu.dimension_semantics<arbitrary>, #tpu.dimension_semantics<arbitrary>], iteration_bounds = array<i64: 2, 2, 1, 2>, scalar_prefetch = 0 : i64, scratch_operands = 4 : i64, tpu.core_type = #tpu.core_type<tc>, window_params = [{transform_indices = @transform_0, window_bounds = array<i64: 1, 16, 128>}, {transform_indices = @transform_1, window_bounds = array<i64: 1, 16, 128>}, {pipeline_mode = #tpu.pipeline_mode<synchronous>, transform_indices = @transform_2, window_bounds = array<i64: 2, 16>}, {pipeline_mode = #tpu.pipeline_mode<synchronous>, transform_indices = @transform_3, window_bounds = array<i64: 2, 16>}, {pipeline_mode = #tpu.pipeline_mode<synchronous>, transform_indices = @transform_4, window_bounds = array<i64: 16, 16>}, {pipeline_mode = #tpu.pipeline_mode<synchronous>, transform_indices = @transform_5, window_bounds = array<i64: 2, 1>}, {pipeline_mode = #tpu.pipeline_mode<synchronous>, transform_indices = @transform_6, window_bounds = array<i64: 2, 1>}, {pipeline_mode = #tpu.pipeline_mode<synchronous>, transform_indices = @transform_7, window_bounds = array<i64: 16, 1>}, {transform_indices = @transform_8, window_bounds = array<i64: 1, 2, 128>}, {transform_indices = @transform_9, window_bounds = array<i64: 1, 128, 16>}, {transform_indices = @transform_10, window_bounds = array<i64: 1, 1, 128>}]} {
    %c0_i32 = arith.constant 0 : i32
    %0 = arith.cmpi eq, %arg3, %c0_i32 : i32
    %1 = arith.extui %0 : i1 to i32
    %c0_i32_0 = arith.constant 0 : i32
    %2 = arith.cmpi ne, %1, %c0_i32_0 : i32
    scf.if %2 {
      %c0_16 = arith.constant 0 : index
      %c0_17 = arith.constant 0 : index
      %c0_18 = arith.constant 0 : index
      %31 = vector.load %arg4[%c0_16, %c0_17, %c0_18] : memref<1x16x128xf32, #tpu.memory_space<vmem>>, vector<1x16x128xf32>
      %32 = vector.shape_cast %31 : vector<1x16x128xf32> to vector<16x128xf32>
      %33 = arith.truncf %32 : vector<16x128xf32> to vector<16x128xbf16>
      %c0_19 = arith.constant 0 : index
      %c0_20 = arith.constant 0 : index
      %34 = vector.load %arg6[%c0_19, %c0_20] : memref<2x16xbf16, #tpu.memory_space<vmem>>, vector<2x16xbf16>
      %cst_21 = arith.constant dense<0.000000e+00> : vector<2x128xf32>
      %35 = tpu.matmul %34, %33, %cst_21 {dimension_numbers = #tpu.dot_dimension_numbers<[1], [0], [0], [1], [0, 0, 1, 1], [], []>} : vector<2x16xbf16>, vector<16x128xbf16>, vector<2x128xf32> -> vector<2x128xf32>
      %c0_22 = arith.constant 0 : index
      %c0_23 = arith.constant 0 : index
      %36 = vector.load %arg9[%c0_22, %c0_23] : memref<2x1xf32, #tpu.memory_space<vmem>>, vector<2x1xf32>
      %37 = vector.broadcast %36 : vector<2x1xf32> to vector<2x128xf32>
      %38 = arith.addf %35, %37 : vector<2x128xf32>
      %c0_24 = arith.constant 0 : index
      %c0_25 = arith.constant 0 : index
      %39 = vector.load %arg8[%c0_24, %c0_25] : memref<16x16xbf16, #tpu.memory_space<vmem>>, vector<16x16xbf16>
      %cst_26 = arith.constant dense<0.000000e+00> : vector<16x128xf32>
      %40 = tpu.matmul %39, %33, %cst_26 {dimension_numbers = #tpu.dot_dimension_numbers<[1], [0], [0], [1], [0, 0, 1, 1], [], []>} : vector<16x16xbf16>, vector<16x128xbf16>, vector<16x128xf32> -> vector<16x128xf32>
      %c0_27 = arith.constant 0 : index
      %c0_28 = arith.constant 0 : index
      %41 = vector.load %arg11[%c0_27, %c0_28] : memref<16x1xf32, #tpu.memory_space<vmem>>, vector<16x1xf32>
      %42 = vector.broadcast %41 : vector<16x1xf32> to vector<16x128xf32>
      %43 = arith.addf %40, %42 : vector<16x128xf32>
      %44 = arith.truncf %38 : vector<2x128xf32> to vector<2x128xbf16>
      %c0_29 = arith.constant 0 : index
      %c0_30 = arith.constant 0 : index
      %45 = vector.load %arg15[%c0_29, %c0_30] : memref<2x128xbf16, #tpu.memory_space<vmem>>, vector<2x128xbf16>
      tpu.vector_store %arg15[%c0_29, %c0_30], %44 {strides = array<i32>} : memref<2x128xbf16, #tpu.memory_space<vmem>>, vector<2x128xbf16>,
      %c0_31 = arith.constant 0 : index
      %c0_32 = arith.constant 0 : index
      %c0_33 = arith.constant 0 : index
      %46 = vector.load %arg12[%c0_31, %c0_32, %c0_33] : memref<1x2x128xbf16, #tpu.memory_space<vmem>>, vector<1x2x128xbf16>
      %47 = vector.shape_cast %46 : vector<1x2x128xbf16> to vector<2x128xbf16>
      %48 = vector.shape_cast %44 : vector<2x128xbf16> to vector<1x2x128xbf16>
      tpu.vector_store %arg12[%c0_31, %c0_32, %c0_33], %48 {strides = array<i32>} : memref<1x2x128xbf16, #tpu.memory_space<vmem>>, vector<1x2x128xbf16>,
      %49 = tpu.transpose %43, [1, 0] : vector<16x128xf32> -> vector<128x16xf32>
      %50 = arith.truncf %49 : vector<128x16xf32> to vector<128x16xbf16>
      %c0_34 = arith.constant 0 : index
      %c0_35 = arith.constant 0 : index
      %c0_36 = arith.constant 0 : index
      %51 = vector.load %arg13[%c0_34, %c0_35, %c0_36] : memref<1x128x16xbf16, #tpu.memory_space<vmem>>, vector<1x128x16xbf16>
      %52 = vector.shape_cast %51 : vector<1x128x16xbf16> to vector<128x16xbf16>
      %53 = vector.shape_cast %50 : vector<128x16xbf16> to vector<1x128x16xbf16>
      tpu.vector_store %arg13[%c0_34, %c0_35, %c0_36], %53 {strides = array<i32>} : memref<1x128x16xbf16, #tpu.memory_space<vmem>>, vector<1x128x16xbf16>,
      %cst_37 = arith.constant 0xFF800000 : f32
      %54 = vector.broadcast %cst_37 : f32 to vector<1x128xf32>
      %c0_38 = arith.constant 0 : index
      %c0_39 = arith.constant 0 : index
      %55 = vector.load %arg17[%c0_38, %c0_39] : memref<1x128xf32, #tpu.memory_space<vmem>>, vector<1x128xf32>
      tpu.vector_store %arg17[%c0_38, %c0_39], %54 {strides = array<i32>} : memref<1x128xf32, #tpu.memory_space<vmem>>, vector<1x128xf32>,
      %cst_40 = arith.constant 0.000000e+00 : f32
      %56 = vector.broadcast %cst_40 : f32 to vector<1x128xf32>
      %c0_41 = arith.constant 0 : index
      %c0_42 = arith.constant 0 : index
      %57 = vector.load %arg18[%c0_41, %c0_42] : memref<1x128xf32, #tpu.memory_space<vmem>>, vector<1x128xf32>
      tpu.vector_store %arg18[%c0_41, %c0_42], %56 {strides = array<i32>} : memref<1x128xf32, #tpu.memory_space<vmem>>, vector<1x128xf32>,
    } else {
    }
    %c0_i32_1 = arith.constant 0 : i32
    %3 = arith.cmpi eq, %arg2, %c0_i32_1 : i32
    %4 = arith.extui %3 : i1 to i32
    %c0_i32_2 = arith.constant 0 : i32
    %5 = arith.cmpi ne, %4, %c0_i32_2 : i32
    scf.if %5 {
      %c0_16 = arith.constant 0 : index
      %c0_17 = arith.constant 0 : index
      %c0_18 = arith.constant 0 : index
      %31 = vector.load %arg5[%c0_16, %c0_17, %c0_18] : memref<1x16x128xf32, #tpu.memory_space<vmem>>, vector<1x16x128xf32>
      %32 = vector.shape_cast %31 : vector<1x16x128xf32> to vector<16x128xf32>
      %33 = arith.truncf %32 : vector<16x128xf32> to vector<16x128xbf16>
      %c0_19 = arith.constant 0 : index
      %c0_20 = arith.constant 0 : index
      %34 = vector.load %arg7[%c0_19, %c0_20] : memref<2x16xbf16, #tpu.memory_space<vmem>>, vector<2x16xbf16>
      %cst_21 = arith.constant dense<0.000000e+00> : vector<2x128xf32>
      %35 = tpu.matmul %34, %33, %cst_21 {dimension_numbers = #tpu.dot_dimension_numbers<[1], [0], [0], [1], [0, 0, 1, 1], [], []>} : vector<2x16xbf16>, vector<16x128xbf16>, vector<2x128xf32> -> vector<2x128xf32>
      %c0_22 = arith.constant 0 : index
      %c0_23 = arith.constant 0 : index
      %36 = vector.load %arg10[%c0_22, %c0_23] : memref<2x1xf32, #tpu.memory_space<vmem>>, vector<2x1xf32>
      %37 = vector.broadcast %36 : vector<2x1xf32> to vector<2x128xf32>
      %38 = arith.addf %35, %37 : vector<2x128xf32>
      %c128_i32_24 = arith.constant 128 : i32
      %39 = arith.muli %arg3, %c128_i32_24 : i32
      %40 = tpu.assume_multiple %39, 128 : i32
      %41 = tpu.transpose %38, [1, 0] : vector<2x128xf32> -> vector<128x2xf32>
      %42 = arith.truncf %41 : vector<128x2xf32> to vector<128x2xbf16>
      %43 = arith.index_cast %40 : i32 to index
      %c0_25 = arith.constant 0 : index
      %44 = vector.load %arg16[%43, %c0_25] : memref<256x2xbf16, #tpu.memory_space<vmem>>, vector<128x2xbf16>
      tpu.vector_store %arg16[%43, %c0_25], %42 {strides = array<i32>} : memref<256x2xbf16, #tpu.memory_space<vmem>>, vector<128x2xbf16>,
    } else {
    }
    %c128_i32 = arith.constant 128 : i32
    %6 = arith.muli %arg3, %c128_i32 : i32
    %7 = tpu.assume_multiple %6, 128 : i32
    %8 = arith.index_cast %7 : i32 to index
    %c0 = arith.constant 0 : index
    %9 = vector.load %arg16[%8, %c0] : memref<256x2xbf16, #tpu.memory_space<vmem>>, vector<128x2xbf16>
    %c0_3 = arith.constant 0 : index
    %c0_4 = arith.constant 0 : index
    %10 = vector.load %arg15[%c0_3, %c0_4] : memref<2x128xbf16, #tpu.memory_space<vmem>>, vector<2x128xbf16>
    %cst = arith.constant dense<0.000000e+00> : vector<128x128xf32>
    %11 = tpu.matmul %9, %10, %cst {dimension_numbers = #tpu.dot_dimension_numbers<[1], [0], [0], [1], [0, 0, 1, 1], [], []>} : vector<128x2xbf16>, vector<2x128xbf16>, vector<128x128xf32> -> vector<128x128xf32>
    %c0_5 = arith.constant 0 : index
    %c0_6 = arith.constant 0 : index
    %12 = vector.load %arg17[%c0_5, %c0_6] : memref<1x128xf32, #tpu.memory_space<vmem>>, vector<1x128xf32>
    %cst_7 = arith.constant dense<0xFF800000> : vector<128xf32>
    %13 = vector.multi_reduction <maximumf>, %11, %cst_7 [0] : vector<128x128xf32> to vector<128xf32>
    %14 = vector.shape_cast %13 : vector<128xf32> to vector<1x128xf32>
    %15 = arith.maximumf %12, %14 : vector<1x128xf32>
    %16 = arith.subf %12, %15 : vector<1x128xf32>
    %17 = math.exp %16 : vector<1x128xf32>
    %18 = vector.broadcast %15 : vector<1x128xf32> to vector<128x128xf32>
    %19 = arith.subf %11, %18 : vector<128x128xf32>
    %20 = math.exp %19 : vector<128x128xf32>
    %c0_8 = arith.constant 0 : index
    %c0_9 = arith.constant 0 : index
    %21 = vector.load %arg18[%c0_8, %c0_9] : memref<1x128xf32, #tpu.memory_space<vmem>>, vector<1x128xf32>
    %22 = arith.mulf %17, %21 : vector<1x128xf32>
    %cst_10 = arith.constant dense<0.000000e+00> : vector<128xf32>
    %23 = vector.multi_reduction <add>, %20, %cst_10 [0] : vector<128x128xf32> to vector<128xf32>
    %24 = vector.shape_cast %23 : vector<128xf32> to vector<1x128xf32>
    %25 = arith.addf %22, %24 : vector<1x128xf32>
    %c0_11 = arith.constant 0 : index
    %c0_12 = arith.constant 0 : index
    %26 = vector.load %arg18[%c0_11, %c0_12] : memref<1x128xf32, #tpu.memory_space<vmem>>, vector<1x128xf32>
    tpu.vector_store %arg18[%c0_11, %c0_12], %25 {strides = array<i32>} : memref<1x128xf32, #tpu.memory_space<vmem>>, vector<1x128xf32>,
    %c0_13 = arith.constant 0 : index
    %c0_14 = arith.constant 0 : index
    %27 = vector.load %arg17[%c0_13, %c0_14] : memref<1x128xf32, #tpu.memory_space<vmem>>, vector<1x128xf32>
    tpu.vector_store %arg17[%c0_13, %c0_14], %15 {strides = array<i32>} : memref<1x128xf32, #tpu.memory_space<vmem>>, vector<1x128xf32>,
    %c1_i32 = arith.constant 1 : i32
    %28 = arith.cmpi eq, %arg3, %c1_i32 : i32
    %29 = arith.extui %28 : i1 to i32
    %c0_i32_15 = arith.constant 0 : i32
    %30 = arith.cmpi ne, %29, %c0_i32_15 : i32
    scf.if %30 {
      %c0_16 = arith.constant 0 : index
      %c0_17 = arith.constant 0 : index
      %31 = vector.load %arg17[%c0_16, %c0_17] : memref<1x128xf32, #tpu.memory_space<vmem>>, vector<1x128xf32>
      %c0_18 = arith.constant 0 : index
      %c0_19 = arith.constant 0 : index
      %32 = vector.load %arg18[%c0_18, %c0_19] : memref<1x128xf32, #tpu.memory_space<vmem>>, vector<1x128xf32>
      %33 = math.log %32 : vector<1x128xf32>
      %34 = arith.addf %31, %33 : vector<1x128xf32>
      %c0_20 = arith.constant 0 : index
      %c0_21 = arith.constant 0 : index
      %c0_22 = arith.constant 0 : index
      %35 = vector.load %arg14[%c0_20, %c0_21, %c0_22] : memref<1x1x128xf32, #tpu.memory_space<vmem>>, vector<1x1x128xf32>
      %36 = vector.shape_cast %35 : vector<1x1x128xf32> to vector<1x128xf32>
      %37 = vector.shape_cast %34 : vector<1x128xf32> to vector<1x1x128xf32>
      tpu.vector_store %arg14[%c0_20, %c0_21, %c0_22], %37 {strides = array<i32>} : memref<1x1x128xf32, #tpu.memory_space<vmem>>, vector<1x1x128xf32>,
    } else {
    }
    return
  }
  func.func @transform_0(%arg0: i32, %arg1: i32, %arg2: i32, %arg3: i32) -> (i32, i32, i32) {
    %c1_i32 = arith.constant 1 : i32
    %0 = arith.muli %arg0, %c1_i32 : i32
    %1 = arith.addi %0, %arg2 : i32
    %c0_i32 = arith.constant 0 : i32
    %c0_i32_0 = arith.constant 0 : i32
    return %arg1, %c0_i32, %1 : i32, i32, i32
  }
  func.func @transform_1(%arg0: i32, %arg1: i32, %arg2: i32, %arg3: i32) -> (i32, i32, i32) {
    %c0_i32 = arith.constant 0 : i32
    %0 = arith.cmpi eq, %arg2, %c0_i32 : i32
    %c0_i32_0 = arith.constant 0 : i32
    %1 = arith.select %0, %arg3, %c0_i32_0 : i32
    %c0_i32_1 = arith.constant 0 : i32
    %c0_i32_2 = arith.constant 0 : i32
    return %arg1, %c0_i32_1, %1 : i32, i32, i32
  }
  func.func @transform_2(%arg0: i32, %arg1: i32, %arg2: i32, %arg3: i32) -> (i32, i32) {
    %c0_i32 = arith.constant 0 : i32
    %c0_i32_0 = arith.constant 0 : i32
    %c0_i32_1 = arith.constant 0 : i32
    return %c0_i32, %c0_i32_0 : i32, i32
  }
  func.func @transform_3(%arg0: i32, %arg1: i32, %arg2: i32, %arg3: i32) -> (i32, i32) {
    %c0_i32 = arith.constant 0 : i32
    %c0_i32_0 = arith.constant 0 : i32
    %c0_i32_1 = arith.constant 0 : i32
    return %c0_i32, %c0_i32_0 : i32, i32
  }
  func.func @transform_4(%arg0: i32, %arg1: i32, %arg2: i32, %arg3: i32) -> (i32, i32) {
    %c0_i32 = arith.constant 0 : i32
    %c0_i32_0 = arith.constant 0 : i32
    %c0_i32_1 = arith.constant 0 : i32
    return %c0_i32, %c0_i32_0 : i32, i32
  }
  func.func @transform_5(%arg0: i32, %arg1: i32, %arg2: i32, %arg3: i32) -> (i32, i32) {
    %c0_i32 = arith.constant 0 : i32
    %c0_i32_0 = arith.constant 0 : i32
    %c0_i32_1 = arith.constant 0 : i32
    return %c0_i32, %c0_i32_0 : i32, i32
  }
  func.func @transform_6(%arg0: i32, %arg1: i32, %arg2: i32, %arg3: i32) -> (i32, i32) {
    %c0_i32 = arith.constant 0 : i32
    %c0_i32_0 = arith.constant 0 : i32
    %c0_i32_1 = arith.constant 0 : i32
    return %c0_i32, %c0_i32_0 : i32, i32
  }
  func.func @transform_7(%arg0: i32, %arg1: i32, %arg2: i32, %arg3: i32) -> (i32, i32) {
    %c0_i32 = arith.constant 0 : i32
    %c0_i32_0 = arith.constant 0 : i32
    %c0_i32_1 = arith.constant 0 : i32
    return %c0_i32, %c0_i32_0 : i32, i32
  }
  func.func @transform_8(%arg0: i32, %arg1: i32, %arg2: i32, %arg3: i32) -> (i32, i32, i32) {
    %c1_i32 = arith.constant 1 : i32
    %0 = arith.muli %arg0, %c1_i32 : i32
    %1 = arith.addi %0, %arg2 : i32
    %c0_i32 = arith.constant 0 : i32
    %c0_i32_0 = arith.constant 0 : i32
    return %arg1, %c0_i32, %1 : i32, i32, i32
  }
  func.func @transform_9(%arg0: i32, %arg1: i32, %arg2: i32, %arg3: i32) -> (i32, i32, i32) {
    %c1_i32 = arith.constant 1 : i32
    %0 = arith.muli %arg0, %c1_i32 : i32
    %1 = arith.addi %0, %arg2 : i32
    %c0_i32 = arith.constant 0 : i32
    %c0_i32_0 = arith.constant 0 : i32
    return %arg1, %1, %c0_i32 : i32, i32, i32
  }
  func.func @transform_10(%arg0: i32, %arg1: i32, %arg2: i32, %arg3: i32) -> (i32, i32, i32) {
    %c1_i32 = arith.constant 1 : i32
    %0 = arith.muli %arg0, %c1_i32 : i32
    %1 = arith.addi %0, %arg2 : i32
    %c0_i32 = arith.constant 0 : i32
    %c0_i32_0 = arith.constant 0 : i32
    return %arg1, %c0_i32, %1 : i32, i32, i32
  }
}

</mosaic_0001>

<bundles_post_ra>
// kernel: tpu_custom_call.1
= control target key start
LH: loop header
LB: loop body
LE: loop exit
PB: predicated region body
PF: predicated region fallthrough
CT: control target
= control target key end

     0   :  { %s2524_s0 = inlined_call_operand.hbm [shape: f32[2,16,256], index: 0, kind: input, shape index: {}]   ;;  %s2525_s1 = inlined_call_operand.hbm [shape: f32[2,16,256], index: 1, kind: input, shape index: {}]   ;;  %s2526_s2 = inlined_call_operand.vmem [shape: bf16[2,16], index: 2, kind: input, shape index: {}]   ;;  %s2527_s3 = inlined_call_operand.vmem [shape: bf16[2,16], index: 3, kind: input, shape index: {}]   ;;  %s2528_s4 = inlined_call_operand.vmem [shape: bf16[16,16], index: 4, kind: input, shape index: {}]   ;;  %s2529_s5 = inlined_call_operand.vmem [shape: f32[2,1], index: 5, kind: input, shape index: {}]   ;;  %s2530_s6 = inlined_call_operand.vmem [shape: f32[2,1], index: 6, kind: input, shape index: {}]   ;;  %s2531_s7 = inlined_call_operand.vmem [shape: f32[16,1], index: 7, kind: input, shape index: {}]   ;;  %s2532_s8 = inlined_call_operand.hbm [shape: bf16[2,2,256], index: 8, kind: output, shape index: {0}]   ;;  %s2533_s9 = inlined_call_operand.vmem [shape: bf16[2,256,16], index: 9, kind: output, shape index: {1}]   ;;  %s2534_s10 = inlined_call_operand.hbm [shape: f32[2,1,256], index: 10, kind: output, shape index: {2}]  }
   0x1   :  { %2555 = sst [smem:[#allocation24_spill]] %s2524_s0 }
   0x2   :  { %2556 = sst [smem:[#allocation25_spill]] %s2525_s1 }
   0x3   :  { %2557 = sst [smem:[#allocation26_spill]] %s2526_s2 }
   0x4   :  { %2558 = sst [smem:[#allocation27_spill]] %s2527_s3 }
   0x5   :  { %2559 = sst [smem:[#allocation28_spill]] %s2528_s4 }
   0x6   :  { %2560 = sst [smem:[#allocation29_spill]] %s2529_s5 }
   0x7   :  { %2561 = sst [smem:[#allocation30_spill]] %s2530_s6 }
   0x8   :  { %2562 = sst [smem:[#allocation31_spill]] %s2531_s7 }
   0x9   :  { %2563 = sst [smem:[#allocation32_spill]] %s2532_s8 }
   0xa   :  { %2564 = sst [smem:[#allocation33_spill]] %s2534_s10 }
   0xb   :  { %16 = vsyncpa [#allocation7], 0 }
   0xc   :  { %18 = vsyncpa [#allocation7 + $0x1], 0 }
   0xd   :  { %19 = vsyncpa [#allocation10], 0 }
   0xe   :  { %21 = vsyncpa [#allocation10 + $0x1], 0 }
   0xf   :  { %22 = vsyncpa [#allocation8], 0 }
  0x10   :  { %24 = vsyncpa [#allocation8 + $0x1], 0 }
  0x11   :  { %25 = vsyncpa [#allocation13], 0 }
  0x12   :  { %27 = vsyncpa [#allocation13 + $0x1], 0  ;;  %s1968_s13 = smov 0   ;;  %s1970_s14 = smov 0  }
  0x13   :  { %s1972_s15 = smov 0   ;;  %s1974_s16 = smov 0  }
  0x14   :  { %s1976_s17 = smov 0   ;;  %s1978_s18 = smov 0  }
  0x15   :  { %s1980_s19 = smov 0   ;;  %s1982_s20 = smov 0  }
  0x16   :  { %s1984_s21 = smov 0   ;;  %s1986_s22 = smov 0  }
  0x17   :  { %s1988_s23 = smov 0   ;;  %s1990_s24 = smov 0  }
  0x18   :  { %s1992_s25 = smov 0  }
  0x19 LB: > { %2565 = sst [smem:[#allocation18_spill]] %s1861_s16  ;;  %s1358_s26 = sadd.s32 4294967295, %s1897_s25   ;;  %s1897_s25 = sphi %s1992_s25, %s33_s25   ;;  %s1893_s24 = sphi %s1990_s24, %s2624_s24   ;;  %s1889_s23 = sphi %s1988_s23, %s2623_s23   ;;  %s1885_s22 = sphi %s1986_s22, %s2613_s22   ;;  %s1881_s21 = sphi %s1984_s21, %s2622_s21   ;;  %s1877_s20 = sphi %s1982_s20, %s2621_s20   ;;  %s1873_s19 = sphi %s1980_s19, %s2612_s19   ;;  %s1869_s18 = sphi %s1978_s18, %s2620_s18   ;;  %s1865_s17 = sphi %s1976_s17, %s2619_s17   ;;  %s1861_s16 = sphi %s1974_s16, %s2618_s16   ;;  %s1857_s15 = sphi %s1972_s15, %s2617_s15   ;;  %s1853_s14 = sphi %s1970_s14, %s2616_s14   ;;  %s1849_s13 = sphi %s1968_s13, %s2615_s13  }
  0x1a   : > { %2566 = sst [smem:[#allocation19_spill]] %s1873_s19  ;;  %s1359_s27 = sadd.s32 4294967294, %s1897_s25  }
  0x1b   : > { %2567 = sst [smem:[#allocation20_spill]] %s1885_s22  ;;  %p77_p0 = scmp.ne.s32.totalorder %s1869_s18, %s1865_s17 }
  0x1c   : > { %p2540_p1 = scmp.eq.s32.totalorder %s1897_s25, 0  ;;  %p83_p2 = scmp.ne.s32.totalorder %s1865_s17, %s1861_s16 }
  0x1d   : > { %p2043_p3 = scmp.eq.s32.totalorder %s1358_s26, 0  ;;  %p269_p4 = scmp.eq.s32.totalorder %s1358_s26, 7 }
  0x1e   : > { %p2049_p5 = por %p2540_p1, %p77_p0  ;;  %p275_p6 = scmp.eq.s32.totalorder %s1359_s27, 7 }
  0x1f   : > { %p2055_p7 = por %p2043_p3, %p83_p2  ;;  %p2059_p8 = por %p269_p4, %p77_p0 }
  0x20   : > { %p2063_p9 = por %p275_p6, %p83_p2  ;;  %p2539_p10 = scmp.lt.s32.totalorder %s1897_s25, 8 }
  0x21   : > { %s2570_s30 = scalar_select %p2055_p7, 1, 0 }
  0x22   : > { %s2571_s29 = scalar_select %p2059_p8, 1, 0 }
  0x23   : > { %s2573_s28 = scalar_select %p2063_p9, 1, 0 }
  0x24   : > { %2572 = sst [smem:[#allocation21_spill]] %s2571_s29  ;;  %s373_s26 = sand.u32 1, %s1869_s18  }
  0x25   : > { %2574 = sst [smem:[#allocation22_spill]] %s2573_s28  ;;  %s1362_s16 = sshll.u32 %s373_s26, 4 }
  0x26   : > { %s1363_s10 = sshll.u32 %s1889_s23, 2  ;;  %s377_s27 = scalar_lea.vmem [#allocation6], %s1362_s16 }
  0x27   : > { %s383_s8 = sadd.s32 %s1893_s24, %s1363_s10  ;;  %s386_s3 = sshll.u32 %s377_s27, 4  ;;  %s2073_s3 = int_to_ptr.vmem [resolvable:$true] %s386_s3 }
  0x28   : > { %s1364_s6 = sshll.u32 %s383_s8, 7  ;;  %s2575_s0 = sld [smem:[#allocation24_spill]] }
  0x29   : > { %p2084_p11 = pnand %p2539_p10, %p2049_p5  ;;  %s2088_s8 = scalar_lea.sflag [#allocation7], %s373_s26 }
  0x2b   : > { %p1665_p13 = pneg %p2084_p11 }
  0x2e   : > { %s2078_s4 = scalar_lea.hbm %s2575_s0, %s1364_s6  ;;  %s1668_s6 = scalar_lea.hbm %s2575_s0, 1024 }
  0x2f   : > { %s1663_s16 = scalar_lea.hbm %s2078_s4, 256  ;;  %p1669_p4 = scmp.lt.u32.totalorder %s2078_s4, %s2575_s0 }
  0x30   : > { %p1664_p12 = scmp.ne.s32.totalorder %s2078_s4, %s1663_s16  ;;  %p1670_p5 = scmp.lt.u32.totalorder %s1668_s6, %s1663_s16 }
  0x31   : > { %p1672_p10 = scmp.lt.u32.totalorder %s1663_s16, %s2078_s4 }
  0x32   : > { %p1666_p0 = pnand %p1665_p13, %p1664_p12  ;;  %p1671_p6 = por %p1670_p5, %p1669_p4 }
  0x34   : > { %p1667_p2 = pneg %p1666_p0  ;;  %p1673_p1 = por %p1672_p10, %p1671_p6 }
  0x36   : > { %p1674_p9 = pnand %p1673_p1, %p1667_p2 }
  0x38   : > { %1677 = shalt.err (!%p1674_p9)
}
  0x39   : > { %s1678_s26 = scalar_lea.vmem %s2073_s3, 256  ;;  %s1899_s2 = smov [#allocation6]  }
  0x3a   : > { %p1679_p12 = scmp.ne.s32.totalorder %s2073_s3, %s1678_s26  ;;  %s1683_s5 = sshll.u32 %s1899_s2, 4  ;;  %s1684_s5 = int_to_ptr.vmem [resolvable:$false] %s1683_s5 }
  0x3b   : > { %s1685_s12 = scalar_lea.vmem %s1684_s5, 512  ;;  %p1686_p7 = scmp.lt.s32.totalorder %s2073_s3, %s1684_s5 }
  0x3c   : > { %p1681_p0 = pnand %p1679_p12, %p1665_p13  ;;  %p1687_p4 = scmp.lt.s32.totalorder %s1685_s12, %s1678_s26 }
  0x3e   : > { %p1682_p8 = pneg %p1681_p0  ;;  %p1688_p5 = por %p1687_p4, %p1686_p7 }
  0x40   : > { %p1689_p10 = pnand %p1688_p5, %p1682_p8 }
  0x42   : > { %1692 = shalt.err (!%p1689_p10)
}
  0x43   : > { %s2543_s16 = smov 256   ;;  %s2544_s6 = smov 128  }
  0x44   : > { %s2545_s27 = smov 8   ;;  %p1368_p1 = scmp.ge.s32.totalorder %s1897_s25, 1 }
  0x45   : > { %1496 = dma.hbm_to_vmem [thread:$0]  (!%p2084_p11), %s2078_s4, 256, %s2073_s3, %s2088_s8, %s2543_s16, %s2544_s6, %s2545_s27  }
  0x46   : > { %p418_p7 = scmp.lt.s32.totalorder %s1897_s25, 9  ;;  %s48_s2 = sadd.s32 1, %s1885_s22 }
  0x47   : > { %p49_p9 = scmp.ge.s32.totalorder %s48_s2, 2  ;;  %s102_s5 = sadd.s32 1, %s1857_s15 }
  0x48   : > { %p2121_p8 = pnand %p1368_p1, %p418_p7  ;;  %p109_p13 = scmp.ne.s32.totalorder %s1857_s15, %s1853_s14 }
  0x49   : > { %p115_p2 = scmp.ne.s32.totalorder %s1853_s14, %s1849_s13  ;;  %s2626_s2 = smov (%p49_p9, %s48_s2), 0 }
  0x4a   : > { %2578 = sst [smem:[#allocation23_spill]] %s2626_s2  ;;  %s2579_s28 = sadd.s32 1, %s1889_s23 }
  0x4b   : > { %s2628_s28 = smov (!%p49_p9, %s2579_s28), %s1889_s23  ;;  %s98_s3 = ssub.s32 %s1885_s22, %s2626_s2 }
  0x4c   : > { %p2580_p11 = scmp.eq.s32.totalorder %s1897_s25, 0  ;;  %p57_p12 = scmp.ge.s32.totalorder %s2628_s28, 2 }
  0x4d   : > { %p2146_p0 = por %p115_p2, %p2043_p3  ;;  %s396_s13 = sand.u32 1, %s1857_s15  }
  0x4e   : > { %p2140_p6 = por %p109_p13, %p2580_p11  ;;  %s407_s12 = sadd.s32 %s1885_s22, %s1363_s10 }
  0x4f   : > { %s2582_s8 = scalar_select %p2146_p0, 1, 0 }
  0x50   : > { %s2630_s28 = smov (%p57_p12, %s2628_s28), 0  ;;  %s2583_s16 = sadd.s32 1, %s1893_s24 }
  0x51   : > { %s2632_s16 = smov (!%p57_p12, %s2583_s16), %s1893_s24  ;;  %s65_s6 = ssub.s32 %s1889_s23, %s2630_s28 }
  0x52   : > { %p61_p4 = scmp.ge.s32.totalorder %s2632_s16, 2  ;;  %s99_s27 = sor.u32 %s98_s3, %s65_s6 }
  0x53   : > { %p100_p5 = scmp.eq.s32.totalorder %s99_s27, 0  ;;  %s1365_s11 = sshll.u32 %s396_s13, 4 }
  0x54   : > { %s2634_s16 = smov (%p61_p4, %s2632_s16), 0  ;;  %s1367_s22 = sshll.u32 %s407_s12, 7 }
  0x55   : > { %s2164_s0 = scalar_select %p100_p5, %s1857_s15, %s102_s5  }
  0x56   : > { %s66_s10 = ssub.s32 %s1893_s24, %s2634_s16  ;;  %s2584_s1 = sld [smem:[#allocation25_spill]] }
  0x57   : > { %s67_s2 = sor.u32 %s66_s10, %s65_s6  ;;  %s400_s27 = scalar_lea.vmem [#allocation9], %s1365_s11 }
  0x58   : > { %p68_p3 = scmp.eq.s32.totalorder %s67_s2, 0  ;;  %s410_s3 = sshll.u32 %s400_s27, 4  ;;  %s2186_s3 = int_to_ptr.vmem [resolvable:$true] %s410_s3 }
  0x59   : > { %p2585_p10 = scmp.lt.s32.totalorder %s1897_s25, 8  ;;  %s2587_s6 = sadd.s32 1, %s1869_s18 }
  0x5a   : > { %s2184_s2 = scalar_select %p68_p3, %s1869_s18, %s2587_s6  }
  0x5b   : > { %p2177_p1 = pnand %p2585_p10, %p2140_p6  ;;  %s2188_s7 = scalar_lea.sflag [#allocation10], %s396_s13 }
  0x5c   : > { %s2171_s19 = scalar_lea.hbm %s2584_s1, %s1367_s22  ;;  %s1698_s12 = scalar_lea.hbm %s2584_s1, 1024 }
  0x5d   : > { %s1693_s22 = scalar_lea.hbm %s2171_s19, 256  ;;  %p1695_p9 = pneg %p2177_p1 }
  0x5e   : > { %p1694_p7 = scmp.ne.s32.totalorder %s2171_s19, %s1693_s22  ;;  %p1699_p11 = scmp.lt.u32.totalorder %s2171_s19, %s2584_s1 }
  0x5f   : > { %p1700_p6 = scmp.lt.u32.totalorder %s1698_s12, %s1693_s22  ;;  %p1702_p4 = scmp.lt.u32.totalorder %s1693_s22, %s2171_s19 }
  0x60   : > { %p1696_p13 = pnand %p1695_p9, %p1694_p7 }
  0x61   : > { %p1701_p12 = por %p1700_p6, %p1699_p11 }
  0x62   : > { %p1697_p2 = pneg %p1696_p13 }
  0x63   : > { %p1703_p5 = por %p1702_p4, %p1701_p12 }
  0x65   : > { %p1704_p3 = pnand %p1703_p5, %p1697_p2 }
  0x67   : > { %1707 = shalt.err (!%p1704_p3)
}
  0x68   : > { %s1708_s13 = scalar_lea.vmem %s2186_s3, 256  ;;  %s1903_s27 = smov [#allocation9]  }
  0x69   : > { %p1709_p10 = scmp.ne.s32.totalorder %s2186_s3, %s1708_s13  ;;  %s1713_s6 = sshll.u32 %s1903_s27, 4  ;;  %s1714_s6 = int_to_ptr.vmem [resolvable:$false] %s1713_s6 }
  0x6a   : > { %s1715_s29 = scalar_lea.vmem %s1714_s6, 512  ;;  %p1716_p0 = scmp.lt.s32.totalorder %s2186_s3, %s1714_s6 }
  0x6b   : > { %p1711_p7 = pnand %p1709_p10, %p1695_p9  ;;  %p1717_p11 = scmp.lt.s32.totalorder %s1715_s29, %s1708_s13 }
  0x6d   : > { %p1712_p13 = pneg %p1711_p7  ;;  %p1718_p6 = por %p1717_p11, %p1716_p0 }
  0x6f   : > { %p1719_p12 = pnand %p1718_p6, %p1712_p13 }
  0x71   : > { %1722 = shalt.err (!%p1719_p12)
}
  0x72   : > { %s2588_s22 = smov 8   ;;  %s2589_s4 = smov 128  }
  0x73   : > { %s2590_s12 = smov 256   ;;  %422 = sbr.rel (%p2121_p8) target bundleno = 1347 (0x543), region = 52 }
  0x74   : > { %1499 = dma.hbm_to_vmem [thread:$0]  (!%p2177_p1), %s2171_s19, 256, %s2186_s3, %s2188_s7, %s2590_s12, %s2589_s4, %s2588_s22  }
  0x75   : > { %s2222_s11 = sand.u32 (!%p2121_p8), 1, %s1865_s17   ;;  %p2591_p0 = scmp.ne.s32.totalorder (!%p2121_p8), %s2570_s30, 0 }
  0x76   : > { %s1369_s10 = sshll.u32 (!%p2121_p8), %s2222_s11, 4  ;;  %s425_s13 = scalar_lea.sflag (!%p2121_p8), [#allocation7], %s2222_s11 }
  0x77   : > { %s428_s27 = scalar_lea.vmem (!%p2121_p8), [#allocation6], %s1369_s10 }
  0x7a   : > { %1832 = dma.done.wait (%p2591_p0), %s425_s13, 256  }
  0x7b   : > { %1834 = vsyncadd (%p2591_p0), %s425_s13, 4294967040  ;;  %s433_s19 = sand.u32 1, %s1853_s14   ;;  %p2592_p8 = scmp.ne.s32.totalorder %s2582_s8, 0 }
  0x7c   : > { %s2231_s3 = sshll.u32 %s433_s19, 4  ;;  %s434_s26 = scalar_lea.sflag [#allocation10], %s433_s19 }
  0x7d   : > { %s437_s5 = scalar_lea.vmem [#allocation9], %s2231_s3 }
  0x7e   : > { %1836 = dma.done.wait (%p2592_p8), %s434_s26, 256  }
  0x7f   : > { %1838 = vsyncadd (%p2592_p8), %s434_s26, 4294967040  ;;  %s1371_s30 = sshll.u32 %s1881_s21, 4  ;;  %p498_p1 = scmp.lt.s32.totalorder %s1877_s20, 1 }
  0x80   : > { %p500_p9 = scmp.lt.s32.totalorder %s1371_s30, 31  ;;  %s473_s8 = scalar_lea.vmem [#allocation11], %s2222_s11 }
  0x81   : > { %s499_s7 = scalar_select %p498_p1, %s1877_s20, 1 }
  0x82   : > { %s2636_s30 = smov (!%p500_p9, %s1371_s30), 31  ;;  %s2593_s19 = sld [smem:[#allocation19_spill]] }
  0x83   : > { %s1372_s6 = sshll.u32 %s499_s7, 5 }
  0x84   : > { %s503_s29 = sadd.s32 %s1372_s6, %s2636_s30 }
  0x85   : > { %s1373_s22 = sshll.u32 %s503_s29, 2 }
  0x86   : > { %s2244_s10 = scalar_lea.vmem %s2533_s9, %s1373_s22 }
  0x88   : > { %p1374_p2 = scmp.ne.s32.totalorder %s2593_s19, 0 }
  0x89   : > { %v514_v0 = vld [vmem:[%s428_s27] sm:$0xff] (!%p1374_p2)  ;;  %v515_v1 = vld [vmem:[%s428_s27 + $0x8] sm:$0xff] (!%p1374_p2)  ;;  %v1904_v2 = vmov (!%p1374_p2), 0.0   ;;  %vm1905_vm0 = vmmov (!%p1374_p2), 0   ;;  %s2594_s7 = sld [smem:[#allocation31_spill]] (!%p1374_p2)  ;;  %s2595_s22 = sld [smem:[#allocation28_spill]] (!%p1374_p2) }
  0x8a   : > { %513 = sbr.rel (%p1374_p2) target bundleno = 551 (0x227), region = 64  ;;  %1451 = vmatprep.subr.bf16.mxu1 (!%p1374_p2), %v1904_v2  ;;  %748 = vst [vmem:[#allocation5] sm:$0x1] (!%p1374_p2), %v1904_v2  ;;  %v516_v3 = vpack.c.bf16 (!%p1374_p2), %v515_v1, %v514_v0  ;;  %1453 = vmatprep.mubr.msk.bf16.mxu1 (!%p1374_p2), %vm1905_vm0, %v1904_v2  ;;  %v1906_v6 = vmov (!%p1374_p2), 0   ;;  %vm524_vm1 = vcmask (!%p1374_p2), 130048   ;;  %s2596_s12 = sld [smem:[#allocation29_spill]] (!%p1374_p2) }
  0x8b   : > { %1623 = vset.pattern.permute.xlu0 (!%p1374_p2), %v1906_v6  ;;  %1445 = vmatprep.subr.bf16.mxu0 (!%p1374_p2), %v1904_v2  ;;  %s2597_s6 = sld [smem:[#allocation26_spill]] (!%p1374_p2)  ;;  %v1907_v25 = vmov (!%p1374_p2), -inf   ;;  %vm730_vm2 = vcmask (!%p1374_p2), 125952  }
  0x8c   : > { %1452 = vmatpush3.bf16.msra.mxu1 (!%p1374_p2), %v516_v3  ;;  %1446 = vmatpush3.bf16.msra.mxu0 (!%p1374_p2), %v516_v3  ;;  %747 = vst [vmem:[#allocation4] sm:$0x1] (!%p1374_p2), %v1907_v25 }
  0x8d   : > { %1447 = vmatprep.mubr.msk.bf16.mxu0 (!%p1374_p2), %vm1905_vm0, %v1904_v2  ;;  %1624 = vset.pattern.permute.xlu1 (!%p1374_p2), %v1906_v6 }
  0x8f   : > { %v570_v4 = vld [vmem:[%s2594_s7] sm:$0xff] (!%p1374_p2)  ;;  %v571_v8 = vld [vmem:[%s2594_s7 + $0x8] sm:$0xff] (!%p1374_p2) }
  0x90   : > { %v1625_v5 = vld [vmem:[%s2595_s22] sm:$0xff] (!%p1374_p2)   ;;  %574 = vperm.xlu0 (!%p1374_p2), %1623, %v570_v4  }
  0x91   : > { %v518_v7 = vld [vmem:[%s2596_s12] sm:$0x3]  ;;  %1454 = vmatmul.mubr.msk.bf16.vlgmr.msra.gmra.mrb[0].mxu1 %vm524_vm1, %v1625_v5 }
  0x92   : > { %v517_v9 = vld [vmem:[%s2597_s6] sm:$0x1]  ;;  %521 = vperm.xlu1 %1624, %v518_v7  }
  0x93   : > { %1448 = vmatmul.mubr.msk.bf16.vlgmr.msra.gmra.mrb[0].mxu0 %vm524_vm1, %v517_v9 }
  0x94   : > { %579 = vperm.xlu0 %1623, %v571_v8  }
 0x10f   : > { %v575_v10 = vpop.permute.xlu0 %574 }
 0x111   : > { %v522_v11 = vpop.permute.xlu1 %521 }
 0x113   : > { %v580_v21 = vpop.permute.xlu0 %579 }
 0x164   : > { %v624_v12 = vpop.f32.mrb[0].mxu1 }
 0x165   : > { %v625_v13 = vadd.f32 %v624_v12, %v575_v10  ;;  %v1455_v14 = vpop.f32.mrb[1].mxu1 }
 0x166   : > { %v562_v15 = vpop.f32.mrb[0].mxu0  ;;  %v627_v16 = vpop.f32.mrb[2].mxu1 }
 0x167   : > { %v563_v17 = vadd.f32 %v562_v15, %v522_v11  ;;  %v1449_v18 = vpop.f32.mrb[1].mxu0  ;;  %634 = vxpose.xlu1.b32.start [1/2] (short) %v625_v13, 128  ;;  %v1456_v19 = vpop.f32.mrb[3].mxu1  ;;  %v628_v24 = vadd.f32 %v627_v16, %v580_v21 }
 0x168   : > { %v565_v20 = vpop.f32.mrb[2].mxu0 }
 0x169   : > { %v631_v22 = vpack.c.bf16 %v563_v17, %v563_v17  ;;  %v1450_v23 = vpop.f32.mrb[3].mxu0 }
 0x16b   : > { %632 = vst [vmem:[#allocation2] sm:$0x1] %v631_v22  ;;  %633 = vst [vmem:[%s473_s8] sm:$0x1] %v631_v22  ;;  %635 = vxpose.xlu1.b32.end [2/2] (short) %v628_v24, 128 }
 0x1e7   : > { %v650_v26 = vpop.trf.xlu1 }
 0x1e8   : > { %v1414_v27 = vpack.c.bf16 %v650_v26, %v650_v26 }
 0x1ea   : > { %731 = vst.msk [vmem:[%s2244_s10] sm:$0xf] %vm730_vm2, %v1414_v27 }
 0x1eb   : > { %v651_v28 = vpop.trf.xlu1 }
 0x1ec   : > { %v1415_v29 = vpack.c.bf16 %v651_v28, %v651_v28 }
 0x1ee   : > { %732 = vst.msk [vmem:[%s2244_s10 + $0x4] sm:$0xf] %vm730_vm2, %v1415_v29 }
 0x1ef   : > { %v652_v30 = vpop.trf.xlu1 }
 0x1f0   : > { %v1416_v31 = vpack.c.bf16 %v652_v30, %v652_v30 }
 0x1f2   : > { %733 = vst.msk [vmem:[%s2244_s10 + $0x8] sm:$0xf] %vm730_vm2, %v1416_v31 }
 0x1f3   : > { %v653_v32 = vpop.trf.xlu1 }
 0x1f4   : > { %v1417_v33 = vpack.c.bf16 %v653_v32, %v653_v32 }
 0x1f6   : > { %734 = vst.msk [vmem:[%s2244_s10 + $0xc] sm:$0xf] %vm730_vm2, %v1417_v33 }
 0x1f7   : > { %v654_v34 = vpop.trf.xlu1 }
 0x1f8   : > { %v1418_v35 = vpack.c.bf16 %v654_v34, %v654_v34 }
 0x1fa   : > { %735 = vst.msk [vmem:[%s2244_s10 + $0x10] sm:$0xf] %vm730_vm2, %v1418_v35 }
 0x1fb   : > { %v655_v36 = vpop.trf.xlu1 }
 0x1fc   : > { %v1419_v37 = vpack.c.bf16 %v655_v36, %v655_v36 }
 0x1fe   : > { %736 = vst.msk [vmem:[%s2244_s10 + $0x14] sm:$0xf] %vm730_vm2, %v1419_v37 }
 0x1ff   : > { %v656_v38 = vpop.trf.xlu1 }
 0x200   : > { %v1420_v39 = vpack.c.bf16 %v656_v38, %v656_v38 }
 0x202   : > { %737 = vst.msk [vmem:[%s2244_s10 + $0x18] sm:$0xf] %vm730_vm2, %v1420_v39 }
 0x203   : > { %v657_v40 = vpop.trf.xlu1 }
 0x204   : > { %v1421_v41 = vpack.c.bf16 %v657_v40, %v657_v40 }
 0x206   : > { %738 = vst.msk [vmem:[%s2244_s10 + $0x1c] sm:$0xf] %vm730_vm2, %v1421_v41 }
 0x207   : > { %v658_v42 = vpop.trf.xlu1 }
 0x208   : > { %v1422_v43 = vpack.c.bf16 %v658_v42, %v658_v42 }
 0x20a   : > { %739 = vst.msk [vmem:[%s2244_s10 + $0x20] sm:$0xf] %vm730_vm2, %v1422_v43 }
 0x20b   : > { %v659_v44 = vpop.trf.xlu1 }
 0x20c   : > { %v1423_v45 = vpack.c.bf16 %v659_v44, %v659_v44 }
 0x20e   : > { %740 = vst.msk [vmem:[%s2244_s10 + $0x24] sm:$0xf] %vm730_vm2, %v1423_v45 }
 0x20f   : > { %v660_v46 = vpop.trf.xlu1 }
 0x210   : > { %v1424_v47 = vpack.c.bf16 %v660_v46, %v660_v46 }
 0x212   : > { %741 = vst.msk [vmem:[%s2244_s10 + $0x28] sm:$0xf] %vm730_vm2, %v1424_v47 }
 0x213   : > { %v661_v48 = vpop.trf.xlu1 }
 0x214   : > { %v1425_v49 = vpack.c.bf16 %v661_v48, %v661_v48 }
 0x216   : > { %742 = vst.msk [vmem:[%s2244_s10 + $0x2c] sm:$0xf] %vm730_vm2, %v1425_v49 }
 0x217   : > { %v662_v50 = vpop.trf.xlu1 }
 0x218   : > { %v1426_v51 = vpack.c.bf16 %v662_v50, %v662_v50 }
 0x21a   : > { %743 = vst.msk [vmem:[%s2244_s10 + $0x30] sm:$0xf] %vm730_vm2, %v1426_v51 }
 0x21b   : > { %v663_v52 = vpop.trf.xlu1 }
 0x21c   : > { %v1427_v53 = vpack.c.bf16 %v663_v52, %v663_v52 }
 0x21e   : > { %744 = vst.msk [vmem:[%s2244_s10 + $0x34] sm:$0xf] %vm730_vm2, %v1427_v53 }
 0x21f   : > { %v664_v54 = vpop.trf.xlu1 }
 0x220   : > { %v1428_v55 = vpack.c.bf16 %v664_v54, %v664_v54 }
 0x222   : > { %745 = vst.msk [vmem:[%s2244_s10 + $0x38] sm:$0xf] %vm730_vm2, %v1428_v55 }
 0x223   : > { %v665_v56 = vpop.trf.xlu1 }
 0x224   : > { %v1429_v57 = vpack.c.bf16 %v665_v56, %v665_v56 }
 0x226   : > { %746 = vst.msk [vmem:[%s2244_s10 + $0x3c] sm:$0xf] %vm730_vm2, %v1429_v57 }
 0x227 PF: > { %v753_v58 = vld [vmem:[%s437_s5] sm:$0xff]  ;;  %v754_v59 = vld [vmem:[%s437_s5 + $0x8] sm:$0xff]  ;;  %v1908_v60 = vmov 0.0   ;;  %vm1909_vm3 = vmmov 0   ;;  %s2598_s22 = sld [smem:[#allocation30_spill]]  ;;  %v1910_v63 = vmov 0  }
 0x228   : > { %1457 = vmatprep.subr.bf16.mxu0 %v1908_v60  ;;  %v755_v61 = vpack.c.bf16 %v754_v59, %v753_v58  ;;  %1459 = vmatprep.mubr.msk.bf16.mxu0 %vm1909_vm3, %v1908_v60  ;;  %s2599_s4 = sld [smem:[#allocation27_spill]]  ;;  %vm763_vm4 = vcmask 130048   ;;  %s2600_s3 = sld [smem:[#allocation19_spill]]  ;;  %v874_v7 = vld [vmem:[#allocation2] sm:$0x1]  ;;  %vm900_vm5 = vcmask 1040384  }
 0x229   : > { %1626 = vset.pattern.permute.xlu0 %v1910_v63  ;;  %v902_v8 = vsel %vm900_vm5, %v874_v7, 0  ;;  %1484 = vmatprep.subr.msk.bf16.mxu1 %vm900_vm5, %v874_v7  ;;  %vm852_vm6 = vcmask 15360  }
 0x22a   : > { %1458 = vmatpush3.bf16.msra.mxu0 %v755_v61  ;;  %1482 = vmatpush3.bf16.msra.mxu1 %v902_v8 }
 0x22b   : > { %1483 = vmatprep.subr.msk.bf16.mxu0 %vm900_vm5, %v874_v7 }
 0x22d   : > { %v757_v62 = vld [vmem:[%s2598_s22] sm:$0x3] }
 0x22e   : > { %v756_v0 = vld [vmem:[%s2599_s4] sm:$0x1]  ;;  %760 = vperm.xlu0 %1626, %v757_v62   ;;  %s1395_s5 = sshll.u32 %s2600_s3, 7  ;;  %p1407_p4 = scmp.ne.s32.totalorder %s2600_s3, 1 }
 0x22f   : > { %1460 = vmatmul.mubr.msk.bf16.vlgmr.msra.gmra.mrb[0].mxu0 %vm763_vm4, %v756_v0  ;;  %s848_s12 = sshra.s32 %s1395_s5, 4  ;;  %s2601_s30 = scalar_lea.vmem (!%p1407_p4), [#allocation12], %s2222_s11 }
 0x230   : > { %1464 = vmatpush3.bf16.msra.mxu0 %v902_v8  ;;  %s1396_s19 = sshll.u32 %s848_s12, 3 }
 0x231   : > { %s2309_s26 = scalar_lea.vmem [#allocation3], %s1396_s19 }
 0x2ad   : > { %v761_v1 = vpop.permute.xlu0 %760 }
 0x302   : > { %v801_v2 = vpop.f32.mrb[0].mxu0 }
 0x303   : > { %v802_v3 = vadd.f32 %v801_v2, %v761_v1  ;;  %v1461_v4 = vpop.f32.mrb[1].mxu0 }
 0x304   : > { %v804_v5 = vpop.f32.mrb[2].mxu0 }
 0x305   : > { %808 = vxpose.xlu0.b32.start.end [1/1] (short) %v802_v3, 128  ;;  %v1462_v6 = vpop.f32.mrb[3].mxu0 }
 0x385   : > { %v824_v9 = vpop.trf.xlu0 }
 0x389   : > { %v825_v10 = vpop.trf.xlu0 }
 0x38a   : > { %v840_v11 = vpack.c.bf16 %v825_v10, %v824_v9  ;;  %v1028_v10 = vlaneseq }
 0x38c   : > { %853 = vst.msk [vmem:[%s2309_s26] sm:$0xff] %vm852_vm6, %v840_v11 }
 0x38d   : > { %v826_v12 = vpop.trf.xlu0 }
 0x391   : > { %v827_v13 = vpop.trf.xlu0 }
 0x392   : > { %v841_v14 = vpack.c.bf16 %v827_v13, %v826_v12  ;;  %v1029_v13 = vshrl.u32 %v1028_v10, 7 }
 0x393   : > { %v866_v15 = vld [vmem:[%s2309_s26] sm:$0xff] }
 0x394   : > { %854 = vst.msk [vmem:[%s2309_s26 + $0x8] sm:$0xff] %vm852_vm6, %v841_v14  ;;  %1465 = vmatprep.mubr.msk.bf16.mxu0 %vm852_vm6, %v866_v15  ;;  %v2376_v15 = vld [vmem:[#allocation4] sm:$0x1] }
 0x395   : > { %v828_v16 = vpop.trf.xlu0 }
 0x399   : > { %v829_v17 = vpop.trf.xlu0 }
 0x39a   : > { %v842_v18 = vpack.c.bf16 %v829_v17, %v828_v16  ;;  %v1030_v17 = vsub.s32 0, %v1029_v13 }
 0x39b   : > { %v867_v19 = vld [vmem:[%s2309_s26 + $0x8] sm:$0xff] }
 0x39c   : > { %855 = vst.msk [vmem:[%s2309_s26 + $0x10] sm:$0xff] %vm852_vm6, %v842_v18  ;;  %1466 = vmatmul.mubr.msk.bf16.vlgmr.msra.gmra.mrb[4].mxu0 %vm852_vm6, %v867_v19 }
 0x39d   : > { %v830_v20 = vpop.trf.xlu0 }
 0x3a1   : > { %v831_v21 = vpop.trf.xlu0 }
 0x3a2   : > { %v843_v22 = vpack.c.bf16 %v831_v21, %v830_v20 }
 0x3a3   : > { %v868_v23 = vld [vmem:[%s2309_s26 + $0x10] sm:$0xff] }
 0x3a4   : > { %856 = vst.msk [vmem:[%s2309_s26 + $0x18] sm:$0xff] %vm852_vm6, %v843_v22  ;;  %1469 = vmatprep.mubr.msk.bf16.mxu1 %vm852_vm6, %v868_v23 }
 0x3a5   : > { %v832_v24 = vpop.trf.xlu0 }
 0x3a9   : > { %v833_v25 = vpop.trf.xlu0 }
 0x3aa   : > { %v844_v26 = vpack.c.bf16 %v833_v25, %v832_v24 }
 0x3ab   : > { %v869_v27 = vld [vmem:[%s2309_s26 + $0x18] sm:$0xff] }
 0x3ac   : > { %857 = vst.msk [vmem:[%s2309_s26 + $0x20] sm:$0xff] %vm852_vm6, %v844_v26  ;;  %1470 = vmatmul.mubr.msk.bf16.vlgmr.msra.gmra.mrb[0].mxu1 %vm852_vm6, %v869_v27 }
 0x3ad   : > { %v834_v28 = vpop.trf.xlu0 }
 0x3b1   : > { %v835_v29 = vpop.trf.xlu0 }
 0x3b2   : > { %v845_v30 = vpack.c.bf16 %v835_v29, %v834_v28 }
 0x3b3   : > { %v870_v31 = vld [vmem:[%s2309_s26 + $0x20] sm:$0xff] }
 0x3b4   : > { %858 = vst.msk [vmem:[%s2309_s26 + $0x28] sm:$0xff] %vm852_vm6, %v845_v30  ;;  %1473 = vmatprep.mubr.msk.bf16.mxu1 %vm852_vm6, %v870_v31 }
 0x3b5   : > { %v836_v32 = vpop.trf.xlu0 }
 0x3b9   : > { %v837_v33 = vpop.trf.xlu0 }
 0x3ba   : > { %v846_v34 = vpack.c.bf16 %v837_v33, %v836_v32 }
 0x3bb   : > { %v871_v35 = vld [vmem:[%s2309_s26 + $0x28] sm:$0xff] }
 0x3bc   : > { %859 = vst.msk [vmem:[%s2309_s26 + $0x30] sm:$0xff] %vm852_vm6, %v846_v34  ;;  %1474 = vmatmul.mubr.msk.bf16.gmra.mrb[4].mxu1 %vm852_vm6, %v871_v35 }
 0x3bd   : > { %v838_v36 = vpop.trf.xlu0 }
 0x3c1   : > { %v839_v37 = vpop.trf.xlu0 }
 0x3c2   : > { %v847_v38 = vpack.c.bf16 %v839_v37, %v838_v36 }
 0x3c3   : > { %v872_v39 = vld [vmem:[%s2309_s26 + $0x30] sm:$0xff] }
 0x3c4   : > { %860 = vst.msk [vmem:[%s2309_s26 + $0x38] sm:$0xff] %vm852_vm6, %v847_v38  ;;  %1477 = vmatprep.mubr.msk.bf16.mxu1 %vm852_vm6, %v872_v39 }
 0x3cb   : > { %v873_v40 = vld [vmem:[%s2309_s26 + $0x38] sm:$0xff] }
 0x3cc   : > { %1478 = vmatmul.mubr.msk.bf16.gmra.mrb[8].mxu1 %vm852_vm6, %v873_v40 }
 0x46f   : > { %v1467_v41 = vpop.f32.mrb[4].mxu0 }
 0x470   : > { %v938_v42 = vpop.f32.mrb[5].mxu0 }
 0x471   : > { %v2343_v43 = vpop.f32.mrb[6].mxu0 }
 0x472   : > { %v941_v44 = vpop.f32.mrb[7].mxu0 }
 0x47f   : > { %v2345_v45 = vpop.f32.mrb[0].mxu1 }
 0x480   : > { %v1004_v46 = vmax.f32 %v1467_v41, %v2345_v45  ;;  %v954_v47 = vpop.f32.mrb[1].mxu1 }
 0x481   : > { %v1002_v48 = vmax.f32 %v938_v42, %v954_v47  ;;  %v2348_v49 = vpop.f32.mrb[2].mxu1 }
 0x482   : > { %v1005_v50 = vmax.f32 %v2343_v43, %v2348_v49  ;;  %v957_v51 = vpop.f32.mrb[3].mxu1 }
 0x483   : > { %v1003_v52 = vmax.f32 %v941_v44, %v957_v51 }
 0x48f   : > { %v2352_v53 = vpop.f32.mrb[4].mxu1 }
 0x490   : > { %v1008_v54 = vmax.f32 %v1004_v46, %v2352_v53  ;;  %v2355_v55 = vpop.f32.mrb[5].mxu1 }
 0x491   : > { %v1006_v56 = vmax.f32 %v1002_v48, %v2355_v55  ;;  %v2358_v57 = vpop.f32.mrb[6].mxu1 }
 0x492   : > { %v1009_v58 = vmax.f32 %v1005_v50, %v2358_v57  ;;  %v2361_v59 = vpop.f32.mrb[7].mxu1 }
 0x493   : > { %v1007_v60 = vmax.f32 %v1003_v52, %v2361_v59 }
 0x49f   : > { %v2364_v61 = vpop.f32.mrb[8].mxu1 }
 0x4a0   : > { %v1012_v62 = vmax.f32 %v1008_v54, %v2364_v61  ;;  %v2367_v63 = vpop.f32.mrb[9].mxu1 }
 0x4a1   : > { %v1010_v0 = vmax.f32 %v1006_v56, %v2367_v63  ;;  %v2370_v1 = vpop.f32.mrb[10].mxu1 }
 0x4a2   : > { %v1013_v2 = vmax.f32 %v1009_v58, %v2370_v1  ;;  %v2373_v3 = vpop.f32.mrb[11].mxu1 }
 0x4a3   : > { %v1011_v4 = vmax.f32 %v1007_v60, %v2373_v3 }
 0x4a4   : > { %v1015_v5 = vmax.f32 %v1012_v62, %v1013_v2 }
 0x4a5   : > { %v1014_v6 = vmax.f32 %v1010_v0, %v1011_v4 }
 0x4a7   : > { %v1016_v7 = vmax.f32 %v1014_v6, %v1015_v5 }
 0x4a9   : > { %v1017_v8 = vrot.slane %v1016_v7, 4 }
 0x4ab   : > { %v1018_v9 = vmax.f32 %v1016_v7, %v1017_v8 }
 0x4ad   : > { %v1019_v11 = vrot.slane %v1018_v9, 2 }
 0x4af   : > { %v1020_v12 = vmax.f32 %v1018_v9, %v1019_v11 }
 0x4b1   : > { %v1021_v14 = vrot.slane %v1020_v12, 1 }
 0x4b3   : > { %v1022_v16 = vmax.f32 %v1020_v12, %v1021_v14 }
 0x4b5   : > { %v2379_v18 = vmax.f32 %v2376_v15, %v1022_v16 }
 0x4b7   : > { %v2382_v19 = vrot.slane %v2379_v18, %v1030_v17  ;;  %1106 = vst [vmem:[#allocation4] sm:$0x1] %v2379_v18  ;;  %v1024_v10 = vsub.f32 %v2376_v15, %v2379_v18 }
 0x4b9   : > { %v1033_v20 = vsub.f32 %v938_v42, %v2382_v19  ;;  %v1034_v21 = vsub.f32 %v941_v44, %v2382_v19  ;;  %v1035_v22 = vsub.f32 %v1467_v41, %v2382_v19  ;;  %v1036_v23 = vsub.f32 %v2343_v43, %v2382_v19 }
 0x4ba   : > { %v1037_v24 = vsub.f32 %v954_v47, %v2382_v19  ;;  %v1038_v25 = vsub.f32 %v957_v51, %v2382_v19  ;;  %v1039_v26 = vsub.f32 %v2345_v45, %v2382_v19  ;;  %v1040_v27 = vsub.f32 %v2348_v49, %v2382_v19 }
 0x4bb   : > { %v1041_v28 = vsub.f32 %v2355_v55, %v2382_v19  ;;  %v1042_v29 = vsub.f32 %v2361_v59, %v2382_v19  ;;  %v1043_v30 = vsub.f32 %v2352_v53, %v2382_v19  ;;  %v1044_v31 = vsub.f32 %v2358_v57, %v2382_v19 }
 0x4bc   : > { %v1045_v32 = vsub.f32 %v2367_v63, %v2382_v19  ;;  %v1046_v33 = vsub.f32 %v2373_v3, %v2382_v19  ;;  %v1047_v34 = vsub.f32 %v2364_v61, %v2382_v19  ;;  %v1048_v35 = vsub.f32 %v2370_v1, %v2382_v19 }
 0x4bd   : > { %v1049_v36 = vmul.f32 1.442695, %v1033_v20  ;;  %v1051_v37 = vmul.f32 1.442695, %v1034_v21  ;;  %v1053_v38 = vmul.f32 1.442695, %v1035_v22 }
 0x4be   : > { %v1055_v39 = vmul.f32 1.442695, %v1036_v23  ;;  %v1057_v40 = vmul.f32 1.442695, %v1037_v24  ;;  %v1059_v41 = vmul.f32 1.442695, %v1038_v25 }
 0x4bf   : > { %1627 = vpow2.f32 %v1049_v36  ;;  %v1061_v42 = vmul.f32 1.442695, %v1039_v26  ;;  %v1063_v43 = vmul.f32 1.442695, %v1040_v27  ;;  %v1065_v46 = vmul.f32 1.442695, %v1041_v28 }
 0x4c0   : > { %1629 = vpow2.f32 %v1051_v37  ;;  %v1067_v49 = vmul.f32 1.442695, %v1042_v29  ;;  %v1069_v52 = vmul.f32 1.442695, %v1043_v30  ;;  %v1071_v55 = vmul.f32 1.442695, %v1044_v31 }
 0x4c1   : > { %1631 = vpow2.f32 %v1053_v38  ;;  %v1073_v58 = vmul.f32 1.442695, %v1045_v32  ;;  %v1075_v61 = vmul.f32 1.442695, %v1046_v33  ;;  %v1077_v0 = vmul.f32 1.442695, %v1047_v34 }
 0x4c2   : > { %1633 = vpow2.f32 %v1055_v39  ;;  %v1079_v3 = vmul.f32 1.442695, %v1048_v35  ;;  %v1025_v16 = vmul.f32 1.442695, %v1024_v10  ;;  %v1081_v28 = vld [vmem:[#allocation5] sm:$0x1] }
 0x4c3   : > { %1635 = vpow2.f32 %v1057_v40  ;;  %v1111_v33 = vld [vmem:[#allocation4] sm:$0x1] (!%p1407_p4) }
 0x4c4   : > { %1637 = vpow2.f32 %v1059_v41 }
 0x4c5   : > { %1639 = vpow2.f32 %v1061_v42 }
 0x4c6   : > { %1641 = vpow2.f32 %v1063_v43 }
 0x4c7   : > { %1643 = vpow2.f32 %v1065_v46 }
 0x4c8   : > { %1645 = vpow2.f32 %v1067_v49 }
 0x4c9   : > { %v1628_v44 = vpop.eup %1627  ;;  %1647 = vpow2.f32 %v1069_v52 }
 0x4ca   : > { %v1630_v45 = vpop.eup %1629  ;;  %1649 = vpow2.f32 %v1071_v55 }
 0x4cb   : > { %v1083_v47 = vadd.f32 %v1630_v45, %v1628_v44  ;;  %v1632_v48 = vpop.eup %1631  ;;  %1651 = vpow2.f32 %v1073_v58 }
 0x4cc   : > { %v1634_v51 = vpop.eup %1633  ;;  %1653 = vpow2.f32 %v1075_v61 }
 0x4cd   : > { %v1084_v50 = vadd.f32 %v1632_v48, %v1083_v47  ;;  %v1636_v54 = vpop.eup %1635  ;;  %1655 = vpow2.f32 %v1077_v0 }
 0x4ce   : > { %v1638_v57 = vpop.eup %1637  ;;  %1657 = vpow2.f32 %v1079_v3 }
 0x4cf   : > { %v1085_v53 = vadd.f32 %v1634_v51, %v1084_v50  ;;  %v1640_v60 = vpop.eup %1639  ;;  %1659 = vpow2.f32 %v1025_v16 }
 0x4d0   : > { %v1642_v63 = vpop.eup %1641 }
 0x4d1   : > { %v1086_v56 = vadd.f32 %v1636_v54, %v1085_v53  ;;  %v1644_v2 = vpop.eup %1643 }
 0x4d2   : > { %v1646_v5 = vpop.eup %1645 }
 0x4d3   : > { %v1087_v59 = vadd.f32 %v1638_v57, %v1086_v56  ;;  %v1648_v7 = vpop.eup %1647 }
 0x4d4   : > { %v1650_v9 = vpop.eup %1649 }
 0x4d5   : > { %v1088_v62 = vadd.f32 %v1640_v60, %v1087_v59  ;;  %v1652_v12 = vpop.eup %1651 }
 0x4d6   : > { %v1654_v14 = vpop.eup %1653 }
 0x4d7   : > { %v1089_v1 = vadd.f32 %v1642_v63, %v1088_v62  ;;  %v1656_v19 = vpop.eup %1655 }
 0x4d8   : > { %v1658_v21 = vpop.eup %1657 }
 0x4d9   : > { %v1090_v4 = vadd.f32 %v1644_v2, %v1089_v1  ;;  %v1660_v27 = vpop.eup %1659 }
 0x4da   : > { %v1082_v30 = vmul.f32 %v1660_v27, %v1081_v28 }
 0x4db   : > { %v1091_v6 = vadd.f32 %v1646_v5, %v1090_v4 }
 0x4dd   : > { %v1092_v8 = vadd.f32 %v1648_v7, %v1091_v6 }
 0x4df   : > { %v1093_v11 = vadd.f32 %v1650_v9, %v1092_v8 }
 0x4e1   : > { %v1094_v13 = vadd.f32 %v1652_v12, %v1093_v11 }
 0x4e3   : > { %v1095_v17 = vadd.f32 %v1654_v14, %v1094_v13 }
 0x4e5   : > { %v1096_v20 = vadd.f32 %v1656_v19, %v1095_v17 }
 0x4e7   : > { %v1097_v22 = vadd.f32 %v1658_v21, %v1096_v20 }
 0x4e9   : > { %v1098_v23 = vrot.slane %v1097_v22, 4 }
 0x4eb   : > { %v1099_v24 = vadd.f32 %v1098_v23, %v1097_v22 }
 0x4ed   : > { %v1100_v25 = vrot.slane %v1099_v24, 2 }
 0x4ef   : > { %v1101_v26 = vadd.f32 %v1100_v25, %v1099_v24 }
 0x4f1   : > { %v1102_v29 = vrot.slane %v1101_v26, 1  ;;  %1110 = sbr.rel (%p1407_p4) target bundleno = 1295 (0x50f), region = 72 }
 0x4f3   : > { %v1103_v15 = vadd.f32 %v1102_v29, %v1101_v26 }
 0x4f5   : > { %v1104_v18 = vadd.f32 %v1103_v15, %v1082_v30 }
 0x4f7   : > { %1105 = vst [vmem:[#allocation5] sm:$0x1] %v1104_v18 }
 0x4fe   : > { %v1112_v31 = vld [vmem:[#allocation5] sm:$0x1] }
 0x4ff   : > { %1661 = vlog2.f32 %v1112_v31 }
 0x509   : > { %v1662_v32 = vpop.eup %1661 }
 0x50a   : > { %v1114_v34 = vmul.f32 0.6931472, %v1662_v32 }
 0x50c   : > { %v1115_v35 = vadd.f32 %v1114_v34, %v1111_v33 }
 0x50e   : > { %1116 = vst [vmem:[%s2601_s30] sm:$0x1] %v1115_v35 }
 0x50f PF: > { %s2602_s6 = sld [smem:[#allocation21_spill]]  ;;  %s1408_s13 = sshll.u32 %s1877_s20, 1 }
 0x510   : > { %s2419_s29 = sadd.s32 %s1881_s21, %s1408_s13  ;;  %s1147_s22 = sshll.u32 %s473_s8, 4  ;;  %s2424_s22 = int_to_ptr.vmem [resolvable:$true] %s1147_s22 }
 0x511   : > { %s2553_s10 = sshll.u32 %s2419_s29, 4  ;;  %s2603_s3 = sld [smem:[#allocation32_spill]] }
 0x512   : > { %s1118_s12 = scalar_lea.sflag [#allocation8], %s2222_s11  ;;  %s1723_s19 = scalar_lea.vmem %s2424_s22, 16 }
 0x513   : > { %p1724_p5 = scmp.ne.s32.totalorder %s2424_s22, %s1723_s19  ;;  %s1911_s20 = smov [#allocation11]  }
 0x514   : > { %s1727_s21 = sshll.u32 %s1911_s20, 4  ;;  %s1728_s21 = int_to_ptr.vmem [resolvable:$false] %s1727_s21 }
 0x515   : > { %p2604_p3 = scmp.ne.s32.totalorder %s2602_s6, 0  ;;  %s1729_s8 = scalar_lea.vmem %s1728_s21, 32 }
 0x516   : > { %p1730_p13 = scmp.lt.s32.totalorder %s2424_s22, %s1728_s21  ;;  %p1731_p11 = scmp.lt.s32.totalorder %s1729_s8, %s1723_s19 }
 0x517   : > { %s1145_s5 = scalar_lea.hbm %s2603_s3, %s2553_s10  ;;  %p1725_p10 = pnand %p1724_p5, %p2604_p3 }
 0x518   : > { %p1732_p6 = por %p1731_p11, %p1730_p13 }
 0x519   : > { %p1726_p7 = pneg %p1725_p10 }
 0x51b   : > { %p1733_p12 = pnand %p1732_p6, %p1726_p7 }
 0x51d   : > { %1736 = shalt.err (!%p1733_p12)
}
 0x51e   : > { %s1737_s26 = scalar_lea.hbm %s1145_s5, 16  ;;  %s1741_s27 = scalar_lea.hbm %s2603_s3, 64 }
 0x51f   : > { %p1738_p0 = scmp.ne.s32.totalorder %s1145_s5, %s1737_s26  ;;  %p1742_p9 = scmp.lt.u32.totalorder %s1145_s5, %s2603_s3 }
 0x520   : > { %p1743_p2 = scmp.lt.u32.totalorder %s1741_s27, %s1737_s26  ;;  %p1745_p5 = scmp.lt.u32.totalorder %s1737_s26, %s1145_s5 }
 0x521   : > { %p1739_p8 = pnand %p1738_p0, %p2604_p3 }
 0x522   : > { %p1744_p4 = por %p1743_p2, %p1742_p9 }
 0x523   : > { %p1740_p1 = pneg %p1739_p8 }
 0x524   : > { %p1746_p10 = por %p1745_p5, %p1744_p4 }
 0x526   : > { %p1747_p7 = pnand %p1746_p10, %p1740_p1 }
 0x528   : > { %1750 = shalt.err (!%p1747_p7)
}
 0x529   : > { %1489 = dma.vmem_to_hbm [thread:$0]  (%p2604_p3), %s2424_s22, 16, %s1145_s5, %s1118_s12  }
 0x52a   : > { %s2605_s19 = sshll.u32 %s2419_s29, 4  ;;  %s2606_s8 = sld [smem:[#allocation33_spill]] }
 0x52b   : > { %s2607_s30 = scalar_lea.vmem [#allocation12], %s2222_s11  ;;  %s1132_s26 = scalar_lea.sflag [#allocation13], %s2222_s11 }
 0x52c   : > { %s1168_s13 = sshll.u32 %s2607_s30, 4  ;;  %s1912_s4 = smov [#allocation12]   ;;  %s1169_s13 = int_to_ptr.vmem [resolvable:$true] %s1168_s13 }
 0x52d   : > { %s1751_s27 = scalar_lea.vmem %s1169_s13, 16  ;;  %s1755_s1 = sshll.u32 %s1912_s4, 4  ;;  %s1756_s1 = int_to_ptr.vmem [resolvable:$false] %s1755_s1 }
 0x52e   : > { %p1752_p13 = scmp.ne.s32.totalorder %s1169_s13, %s1751_s27  ;;  %s1757_s3 = scalar_lea.vmem %s1756_s1, 32 }
 0x52f   : > { %p1758_p12 = scmp.lt.s32.totalorder %s1169_s13, %s1756_s1  ;;  %p1759_p0 = scmp.lt.s32.totalorder %s1757_s3, %s1751_s27 }
 0x530   : > { %s2453_s10 = scalar_lea.hbm %s2606_s8, %s2605_s19  ;;  %p1753_p11 = pnand %p1752_p13, %p2604_p3 }
 0x531   : > { %p1760_p8 = por %p1759_p0, %p1758_p12 }
 0x532   : > { %p1754_p6 = pneg %p1753_p11 }
 0x534   : > { %p1761_p1 = pnand %p1760_p8, %p1754_p6 }
 0x536   : > { %1764 = shalt.err (!%p1761_p1)
}
 0x537   : > { %s1765_s11 = scalar_lea.hbm %s2453_s10, 16  ;;  %s1769_s5 = scalar_lea.hbm %s2606_s8, 64 }
 0x538   : > { %p1766_p9 = scmp.ne.s32.totalorder %s2453_s10, %s1765_s11  ;;  %p1770_p5 = scmp.lt.u32.totalorder %s2453_s10, %s2606_s8 }
 0x539   : > { %p1771_p10 = scmp.lt.u32.totalorder %s1769_s5, %s1765_s11  ;;  %p1773_p13 = scmp.lt.u32.totalorder %s1765_s11, %s2453_s10 }
 0x53a   : > { %p1767_p2 = pnand %p1766_p9, %p2604_p3 }
 0x53b   : > { %p1772_p7 = por %p1771_p10, %p1770_p5 }
 0x53c   : > { %p1768_p4 = pneg %p1767_p2 }
 0x53d   : > { %p1774_p11 = por %p1773_p13, %p1772_p7 }
 0x53f   : > { %p1775_p6 = pnand %p1774_p11, %p1768_p4 }
 0x541   : > { %1778 = shalt.err (!%p1775_p6)
}
 0x542   : > { %1490 = dma.vmem_to_hbm [thread:$0]  (%p2604_p3), %s1169_s13, 16, %s2453_s10, %s1132_s26  }
 0x543 PF: > { %s2608_s3 = sld [smem:[#allocation18_spill]]  ;;  %s2609_s19 = sld [smem:[#allocation22_spill]] }
 0x544   : > { %p1508_p12 = scmp.ge.s32.totalorder %s1897_s25, 2 }
 0x549   : > { %s1180_s20 = sand.u32 1, %s2608_s3   ;;  %p2610_p0 = scmp.ne.s32.totalorder %s2609_s19, 0 }
 0x54a   : > { %s1181_s21 = scalar_lea.sflag [#allocation8], %s1180_s20 }
 0x54b   : > { %p1501_p8 = pnand %p1508_p12, %p2610_p0 }
 0x54d   : > { %1840 = dma.done.wait (!%p1501_p8), %s1181_s21, 16  }
 0x54e   : > { %1842 = vsyncadd (!%p1501_p8), %s1181_s21, 4294967280  ;;  %s1202_s30 = scalar_lea.sflag [#allocation13], %s1180_s20 }
 0x54f   : > { %1844 = dma.done.wait (!%p1501_p8), %s1202_s30, 16  }
 0x550   : > { %1846 = vsyncadd (!%p1501_p8), %s1202_s30, 4294967280  ;;  %s33_s25 = sadd.s32 1, %s1897_s25   ;;  %s2612_s19 = sld [smem:[#allocation20_spill]] }
 0x551   : > { %p2480_p1 = scmp.ge.s32.totalorder %s33_s25, 10   ;;  %s2613_s22 = sld [smem:[#allocation23_spill]] }
 0x552   : > { %s2614_s10 = smov %s2634_s16  ;;  %s2615_s13 = smov %s1853_s14 }
 0x553   : > { %s2616_s14 = smov %s1857_s15  ;;  %s2617_s15 = smov %s2164_s0 }
 0x554   : > { %s2618_s16 = smov %s1865_s17  ;;  %s2619_s17 = smov %s1869_s18 }
 0x555   : > { %s2620_s18 = smov %s2184_s2  ;;  %s2621_s20 = smov %s1889_s23 }
 0x556   : > { %s2622_s21 = smov %s1893_s24  ;;  %s2623_s23 = smov %s2630_s28 }
 0x557   : > { %s2624_s24 = smov %s2614_s10  ;;  %32 = sbr.rel (!%p2480_p1) target bundleno = 25 (0x19), region = 153 }
 0x55e   :  { %1206 = vsyncpa [#allocation7], 1 }
 0x55f   :  { %1208 = vsyncpa [#allocation7 + $0x1], 1 }
 0x560   :  { %1209 = vsyncpa [#allocation10], 1 }
 0x561   :  { %1211 = vsyncpa [#allocation10 + $0x1], 1 }
 0x562   :  { %1212 = vsyncpa [#allocation8], 1 }
 0x563   :  { %1214 = vsyncpa [#allocation8 + $0x1], 1 }
 0x564   :  { %1215 = vsyncpa [#allocation13], 1 }
 0x565   :  { %1217 = vsyncpa [#allocation13 + $0x1], 1 }

</bundles_post_ra>
